<compile_context>
chip_gen: v5e
topology: v5e:2x2
jax: 0.10.0
libtpu: 0.0.40
codegen_flags: <defaults>
</compile_context>

<pallas_src>
import jax
import jax.numpy as jnp
from jax import lax
from jax.experimental import pallas as pl
from jax.experimental.pallas import tpu as pltpu

LANES = 128
MAX_TILE_ROWS = 2048   # 2048*128*4B = 1 MiB/block; 2 inputs x 2 buffers = 4 MiB VMEM (fits all gens)
MAX_SPLIT = 2          # leading "parallel" axis: 2 TensorCores on v7x, harmless on v5e/v6e


def _make_dice_partials_kernel(tile_rows, tiles_per_split, total, needs_mask):
    """Kernel producing lane-wise partial sums: out[0]=sum(p*t), out[1]=sum(p), out[2]=sum(t)."""

    def kernel(pred_ref, tgt_ref, out_ref):
        c = pl.program_id(0)   # parallel split index
        j = pl.program_id(1)   # sequential tile index within split

        @pl.when(j == 0)
        def _init():
            out_ref[...] = jnp.zeros_like(out_ref)

        x = pred_ref[...].astype(jnp.float32)
        t = tgt_ref[...].astype(jnp.float32)
        p = jax.nn.sigmoid(x)

        if needs_mask:
            # Mask out lane padding, partial last tile (OOB block region) and phantom
            # (clamped duplicate) tiles: any flat element index >= true element count
            # contributes exactly 0 to all three sums.
            tile_idx = c * tiles_per_split + j
            row = lax.broadcasted_iota(jnp.int32, (tile_rows, LANES), 0)
            lane = lax.broadcasted_iota(jnp.int32, (tile_rows, LANES), 1)
            gidx = (tile_idx * tile_rows + row) * LANES + lane
            valid = gidx < total
            p = jnp.where(valid, p, 0.0)
            t = jnp.where(valid, t, 0.0)

        # Sublane-only reductions; cross-lane reduction is deferred to the wrapper.
        out_ref[0:1, :] += jnp.sum(p * t, axis=0, keepdims=True)
        out_ref[1:2, :] += jnp.sum(p, axis=0, keepdims=True)
        out_ref[2:3, :] += jnp.sum(t, axis=0, keepdims=True)

    return kernel


def dice_loss(predicted, target, smooth=1.0, *, max_tile_rows=MAX_TILE_ROWS):
    """Pallas TPU DiceLoss forward. predicted/target: matching shapes (e.g. NCHW)."""
    assert predicted.shape == target.shape
    total = int(predicted.size)

    # Flatten in the native dtype (the kernel upcasts in-register).
    pred_flat = predicted.reshape(-1)
    tgt_flat = target.reshape(-1)

    # Only pad to a lane multiple when strictly required (pad < 128 elements);
    # padded values are discarded by the in-kernel mask.
    rem = total % LANES
    if rem:
        pad = LANES - rem
        pred_flat = jnp.pad(pred_flat, (0, pad))
        tgt_flat = jnp.pad(tgt_flat, (0, pad))

    rows = pred_flat.size // LANES
    pred2d = pred_flat.reshape(rows, LANES)
    tgt2d = tgt_flat.reshape(rows, LANES)

    # Small inputs collapse to a single full-extent block (one grid step).
    tile_rows = rows if rows <= max_tile_rows else max_tile_rows
    num_tiles = pl.cdiv(rows, tile_rows)
    split = min(MAX_SPLIT, num_tiles)
    tiles_per_split = pl.cdiv(num_tiles, split)
    covered = split * tiles_per_split * tile_rows * LANES
    needs_mask = covered != total

    def in_index_map(c, j):
        tile = c * tiles_per_split + j
        # Phantom tiles (beyond the real tile count) clamp to the last real tile;
        # their contribution is zeroed by the in-kernel mask.
        tile = jnp.minimum(tile, num_tiles - 1)
        return (tile, 0)

    kernel = _make_dice_partials_kernel(tile_rows, tiles_per_split, total, needs_mask)

    partials = pl.pallas_call(
        kernel,
        out_shape=jax.ShapeDtypeStruct((split, 3, LANES), jnp.float32),
        grid_spec=pltpu.PrefetchScalarGridSpec(
            num_scalar_prefetch=0,
            grid=(split, tiles_per_split),
            in_specs=[
                pl.BlockSpec((tile_rows, LANES), in_index_map),
                pl.BlockSpec((tile_rows, LANES), in_index_map),
            ],
            out_specs=pl.BlockSpec((None, 3, LANES), lambda c, j: (c, 0, 0)),
        ),
        compiler_params=pltpu.CompilerParams(
            dimension_semantics=("parallel", "arbitrary")),
    )(pred2d, tgt2d)

    # Tiny epilogue in plain JAX: combine per-core / per-lane partials + dice formula.
    sums = jnp.sum(partials, axis=(0, 2))  # (3,)
    inter, psum, tsum = sums[0], sums[1], sums[2]
    smooth = jnp.float32(smooth)
    union = psum + tsum + smooth
    return 1.0 - (2.0 * inter + smooth) / union


def dice_loss_ref(predicted, target, smooth=1.0):
    p = jax.nn.sigmoid(predicted.astype(jnp.float32))
    t = target.astype(jnp.float32)
    inter = jnp.sum(p * t)
    union = jnp.sum(p) + jnp.sum(t) + smooth
    return 1.0 - (2.0 * inter + smooth) / union


if __name__ == "__main__":
    key = jax.random.PRNGKey(0)

    # (shape, dice_loss kwargs) — exercise: single-tile fast path, multi-tile with
    # 2-way split + cross-tile accumulation, and the non-128-multiple mask path.
    cases = [
        ((2, 4, 16, 16), {}),
        ((2, 4, 32, 32), {"max_tile_rows": 8}),
        ((1, 3, 7, 11), {}),
    ]

    for shape, kwargs in cases:
        key, k1, k2 = jax.random.split(key, 3)
        predicted = jax.random.normal(k1, shape, dtype=jnp.float32)
        target = (jax.random.uniform(k2, shape) > 0.5).astype(jnp.float32)

        loss = dice_loss(predicted, target, smooth=1.0, **kwargs)
        loss = jax.block_until_ready(loss)

        ref = dice_loss_ref(predicted, target, smooth=1.0)
        assert jnp.allclose(loss, ref, atol=1e-5, rtol=1e-5), (shape, loss, ref)

    print("KERNEL_OK")
</pallas_src>

<mosaic_0001>
module attributes {stable_mosaic.version = 11 : i64} {
  func.func @kernel(%arg0: i32, %arg1: i32, %arg2: memref<16x128xf32, #tpu.memory_space<vmem>>, %arg3: memref<16x128xf32, #tpu.memory_space<vmem>>, %arg4: memref<1x3x128xf32, #tpu.memory_space<vmem>>) attributes {dimension_semantics = [#tpu.dimension_semantics<parallel>, #tpu.dimension_semantics<arbitrary>], iteration_bounds = array<i64: 1, 1>, scalar_prefetch = 0 : i64, scratch_operands = 0 : i64, tpu.core_type = #tpu.core_type<tc>, window_params = [{transform_indices = @transform_0, window_bounds = array<i64: 16, 128>}, {transform_indices = @transform_1, window_bounds = array<i64: 16, 128>}, {transform_indices = @transform_2, window_bounds = array<i64: 1, 3, 128>}]} {
    %c0_i32 = arith.constant 0 : i32
    %0 = arith.cmpi eq, %arg1, %c0_i32 : i32
    %1 = arith.extui %0 : i1 to i32
    %c0_i32_0 = arith.constant 0 : i32
    %2 = arith.cmpi ne, %1, %c0_i32_0 : i32
    scf.if %2 {
      %cst_23 = arith.constant 0.000000e+00 : f32
      %35 = vector.broadcast %cst_23 : f32 to vector<3x128xf32>
      %c0_24 = arith.constant 0 : index
      %c0_25 = arith.constant 0 : index
      %c0_26 = arith.constant 0 : index
      %36 = vector.load %arg4[%c0_24, %c0_25, %c0_26] : memref<1x3x128xf32, #tpu.memory_space<vmem>>, vector<1x3x128xf32>
      %37 = vector.shape_cast %36 : vector<1x3x128xf32> to vector<3x128xf32>
      %38 = vector.shape_cast %35 : vector<3x128xf32> to vector<1x3x128xf32>
      tpu.vector_store %arg4[%c0_24, %c0_25, %c0_26], %38 {strides = array<i32>} : memref<1x3x128xf32, #tpu.memory_space<vmem>>, vector<1x3x128xf32>,
    } else {
    }
    %c0 = arith.constant 0 : index
    %c0_1 = arith.constant 0 : index
    %3 = vector.load %arg2[%c0, %c0_1] : memref<16x128xf32, #tpu.memory_space<vmem>>, vector<16x128xf32>
    %c0_2 = arith.constant 0 : index
    %c0_3 = arith.constant 0 : index
    %4 = vector.load %arg3[%c0_2, %c0_3] : memref<16x128xf32, #tpu.memory_space<vmem>>, vector<16x128xf32>
    %5 = arith.negf %3 : vector<16x128xf32>
    %6 = math.exp %5 : vector<16x128xf32>
    %cst = arith.constant 1.000000e+00 : f32
    %7 = vector.broadcast %cst : f32 to vector<16x128xf32>
    %8 = arith.addf %7, %6 : vector<16x128xf32>
    %9 = arith.divf %7, %8 : vector<16x128xf32>
    %c0_4 = arith.constant 0 : index
    %c0_5 = arith.constant 0 : index
    %c0_6 = arith.constant 0 : index
    %10 = vector.load %arg4[%c0_4, %c0_5, %c0_6] : memref<1x3x128xf32, #tpu.memory_space<vmem>>, vector<1x1x128xf32>
    %11 = vector.shape_cast %10 : vector<1x1x128xf32> to vector<1x128xf32>
    %12 = arith.mulf %9, %4 : vector<16x128xf32>
    %cst_7 = arith.constant dense<0.000000e+00> : vector<128xf32>
    %13 = vector.multi_reduction <add>, %12, %cst_7 [0] : vector<16x128xf32> to vector<128xf32>
    %14 = vector.shape_cast %13 : vector<128xf32> to vector<1x128xf32>
    %15 = arith.addf %11, %14 : vector<1x128xf32>
    %c0_8 = arith.constant 0 : index
    %c0_9 = arith.constant 0 : index
    %c0_10 = arith.constant 0 : index
    %16 = vector.load %arg4[%c0_8, %c0_9, %c0_10] : memref<1x3x128xf32, #tpu.memory_space<vmem>>, vector<1x1x128xf32>
    %17 = vector.shape_cast %16 : vector<1x1x128xf32> to vector<1x128xf32>
    %18 = vector.shape_cast %15 : vector<1x128xf32> to vector<1x1x128xf32>
    tpu.vector_store %arg4[%c0_8, %c0_9, %c0_10], %18 {strides = array<i32>} : memref<1x3x128xf32, #tpu.memory_space<vmem>>, vector<1x1x128xf32>,
    %c0_11 = arith.constant 0 : index
    %c1 = arith.constant 1 : index
    %c0_12 = arith.constant 0 : index
    %19 = vector.load %arg4[%c0_11, %c1, %c0_12] : memref<1x3x128xf32, #tpu.memory_space<vmem>>, vector<1x1x128xf32>
    %20 = vector.shape_cast %19 : vector<1x1x128xf32> to vector<1x128xf32>
    %cst_13 = arith.constant dense<0.000000e+00> : vector<128xf32>
    %21 = vector.multi_reduction <add>, %9, %cst_13 [0] : vector<16x128xf32> to vector<128xf32>
    %22 = vector.shape_cast %21 : vector<128xf32> to vector<1x128xf32>
    %23 = arith.addf %20, %22 : vector<1x128xf32>
    %c0_14 = arith.constant 0 : index
    %c1_15 = arith.constant 1 : index
    %c0_16 = arith.constant 0 : index
    %24 = vector.load %arg4[%c0_14, %c1_15, %c0_16] : memref<1x3x128xf32, #tpu.memory_space<vmem>>, vector<1x1x128xf32>
    %25 = vector.shape_cast %24 : vector<1x1x128xf32> to vector<1x128xf32>
    %26 = vector.shape_cast %23 : vector<1x128xf32> to vector<1x1x128xf32>
    tpu.vector_store %arg4[%c0_14, %c1_15, %c0_16], %26 {strides = array<i32>} : memref<1x3x128xf32, #tpu.memory_space<vmem>>, vector<1x1x128xf32>,
    %c0_17 = arith.constant 0 : index
    %c2 = arith.constant 2 : index
    %c0_18 = arith.constant 0 : index
    %27 = vector.load %arg4[%c0_17, %c2, %c0_18] : memref<1x3x128xf32, #tpu.memory_space<vmem>>, vector<1x1x128xf32>
    %28 = vector.shape_cast %27 : vector<1x1x128xf32> to vector<1x128xf32>
    %cst_19 = arith.constant dense<0.000000e+00> : vector<128xf32>
    %29 = vector.multi_reduction <add>, %4, %cst_19 [0] : vector<16x128xf32> to vector<128xf32>
    %30 = vector.shape_cast %29 : vector<128xf32> to vector<1x128xf32>
    %31 = arith.addf %28, %30 : vector<1x128xf32>
    %c0_20 = arith.constant 0 : index
    %c2_21 = arith.constant 2 : index
    %c0_22 = arith.constant 0 : index
    %32 = vector.load %arg4[%c0_20, %c2_21, %c0_22] : memref<1x3x128xf32, #tpu.memory_space<vmem>>, vector<1x1x128xf32>
    %33 = vector.shape_cast %32 : vector<1x1x128xf32> to vector<1x128xf32>
    %34 = vector.shape_cast %31 : vector<1x128xf32> to vector<1x1x128xf32>
    tpu.vector_store %arg4[%c0_20, %c2_21, %c0_22], %34 {strides = array<i32>} : memref<1x3x128xf32, #tpu.memory_space<vmem>>, vector<1x1x128xf32>,
    return
  }
  func.func @transform_0(%arg0: i32, %arg1: i32) -> (i32, i32) {
    %c1_i32 = arith.constant 1 : i32
    %0 = arith.muli %arg0, %c1_i32 : i32
    %1 = arith.addi %0, %arg1 : i32
    %c0_i32 = arith.constant 0 : i32
    %2 = arith.minsi %1, %c0_i32 : i32
    %c0_i32_0 = arith.constant 0 : i32
    %c0_i32_1 = arith.constant 0 : i32
    return %2, %c0_i32_0 : i32, i32
  }
  func.func @transform_1(%arg0: i32, %arg1: i32) -> (i32, i32) {
    %c1_i32 = arith.constant 1 : i32
    %0 = arith.muli %arg0, %c1_i32 : i32
    %1 = arith.addi %0, %arg1 : i32
    %c0_i32 = arith.constant 0 : i32
    %2 = arith.minsi %1, %c0_i32 : i32
    %c0_i32_0 = arith.constant 0 : i32
    %c0_i32_1 = arith.constant 0 : i32
    return %2, %c0_i32_0 : i32, i32
  }
  func.func @transform_2(%arg0: i32, %arg1: i32) -> (i32, i32, i32) {
    %c0_i32 = arith.constant 0 : i32
    %c0_i32_0 = arith.constant 0 : i32
    %c0_i32_1 = arith.constant 0 : i32
    return %arg0, %c0_i32, %c0_i32_0 : i32, i32, i32
  }
}

</mosaic_0001>

<bundles_post_ra>
// kernel: tpu_custom_call.1
= control target key start
LH: loop header
LB: loop body
LE: loop exit
PB: predicated region body
PF: predicated region fallthrough
CT: control target
= control target key end

     0   :  { %7 = vsyncpa [#allocation3], 0  ;;  %s266_s0 = inlined_call_operand.hbm [shape: f32[16,128], index: 0, kind: input, shape index: {}]   ;;  %s267_s1 = inlined_call_operand.hbm [shape: f32[16,128], index: 1, kind: input, shape index: {}]   ;;  %s268_s2 = inlined_call_operand.vmem [shape: f32[1,3,128], index: 2, kind: output, shape index: {}]  }
   0x1   :  { %s19_s11 = sshll.u32 %s266_s0, 4  ;;  %s20_s11 = int_to_ptr.hbm [resolvable:$true] %s19_s11 }
   0x2   :  { %8 = vsyncpa [#allocation5], 0  ;;  %s219_s12 = smov [#allocation2]   ;;  %s38_s16 = sshll.u32 %s267_s1, 4  ;;  %s39_s16 = int_to_ptr.hbm [resolvable:$true] %s38_s16 }
   0x3   :  { %s21_s13 = sshll.u32 %s219_s12, 4  ;;  %s220_s17 = smov 128   ;;  %s22_s13 = int_to_ptr.vmem [resolvable:$true] %s21_s13 }
   0x4   :  { %s221_s18 = smov 8   ;;  %s222_s19 = smov [#allocation4]  }
   0x5   :  { %27 = dma.hbm_to_vmem [thread:$0]  %s20_s11, 256, %s22_s13, [#allocation3], %s220_s17, %s220_s17, %s221_s18  }
   0x6   :  { %s40_s20 = sshll.u32 %s222_s19, 4  ;;  %s41_s20 = int_to_ptr.vmem [resolvable:$true] %s40_s20 }
   0x7   :  { %46 = dma.hbm_to_vmem [thread:$0]  %s39_s16, 256, %s41_s20, [#allocation5], %s220_s17, %s220_s17, %s221_s18  }
   0x8   :  { %215 = dma.done.wait [#allocation3], 256  }
   0x9   :  { %216 = vsyncadd [#allocation3], 4294967040 }
   0xa   :  { %217 = dma.done.wait [#allocation5], 256  }
   0xb   :  { %218 = vsyncadd [#allocation5], 4294967040  ;;  %v223_v0 = vmov 0.0   ;;  %v68_v1 = vld [vmem:[#allocation2] sm:$0xff]  ;;  %v69_v2 = vld [vmem:[#allocation2 + $0x8] sm:$0xff] }
   0xc   :  { %67 = vst [vmem:[%s268_s2] sm:$0x7] %v223_v0  ;;  %v70_v3 = vld [vmem:[#allocation4] sm:$0xff]  ;;  %v71_v4 = vld [vmem:[#allocation4 + $0x8] sm:$0xff]  ;;  %v152_v5 = vmul.f32 -1.442695, %v68_v1 }
   0xd   :  { %v153_v6 = vmul.f32 -1.442695, %v69_v2  ;;  %v133_v7 = vadd.f32 %v71_v4, %v70_v3 }
   0xe   :  { %159 = vpow2.f32 %v152_v5 }
   0xf   :  { %161 = vpow2.f32 %v153_v6  ;;  %v134_v8 = vrot.slane %v133_v7, 4 }
  0x11   :  { %v135_v9 = vadd.f32 %v134_v8, %v133_v7 }
  0x13   :  { %v136_v10 = vrot.slane %v135_v9, 2  ;;  %v132_v17 = vld [vmem:[%s268_s2 + $0x2] sm:$0x1]  ;;  %v122_v53 = vld [vmem:[%s268_s2 + $0x1] sm:$0x1] }
  0x14   :  { %v160_v11 = vpop.eup %159  ;;  %v110_v56 = vld [vmem:[%s268_s2] sm:$0x1] }
  0x15   :  { %v162_v12 = vpop.eup %161  ;;  %v78_v13 = vadd.f32 1.0, %v160_v11  ;;  %v137_v14 = vadd.f32 %v136_v10, %v135_v9 }
  0x16   :  { %v79_v15 = vadd.f32 1.0, %v162_v12 }
  0x17   :  { %163 = vrcp.f32 %v78_v13  ;;  %v138_v16 = vrot.slane %v137_v14, 1  ;;  %vm85_vm0 = vweird.f32 %v78_v13  ;;  %v91_v23 = vand.u32 2147483648, %v78_v13 }
  0x18   :  { %165 = vrcp.f32 %v79_v15  ;;  %v89_v26 = vand.u32 2147483647, %v78_v13  ;;  %v106_v27 = vand.u32 2147483648, %v79_v15  ;;  %vm100_vm2 = vweird.f32 %v79_v15 }
  0x19   :  { %v139_v18 = vadd.f32 %v138_v16, %v137_v14  ;;  %v104_v29 = vand.u32 2147483647, %v79_v15  ;;  %v92_v31 = vor.u32 1.1754944e-38, %v91_v23 }
  0x1a   :  { %vm90_vm5 = vcmp.eq.f32.partialorder %v89_v26, 8.507059e+37  ;;  %v107_v34 = vor.u32 1.1754944e-38, %v106_v27 }
  0x1b   :  { %v140_v20 = vadd.f32 %v139_v18, %v132_v17  ;;  %vm105_vm7 = vcmp.eq.f32.partialorder %v104_v29, 8.507059e+37 }
  0x1d   :  { %v164_v19 = vpop.eup %163  ;;  %141 = vst [vmem:[%s268_s2 + $0x2] sm:$0x1] %v140_v20 }
  0x1e   :  { %v166_v21 = vpop.eup %165  ;;  %v81_v22 = vmul.f32 %v164_v19, %v78_v13  ;;  %vm86_vm1 = vweird.f32 %v164_v19 }
  0x1f   :  { %v96_v24 = vmul.f32 %v166_v21, %v79_v15  ;;  %vm101_vm3 = vweird.f32 %v166_v21  ;;  %vm87_vm4 = vmor %vm85_vm0, %vm86_vm1 }
  0x20   :  { %v82_v25 = vsub.f32 1.0, %v81_v22  ;;  %vm102_vm6 = vmor %vm100_vm2, %vm101_vm3 }
  0x21   :  { %v97_v28 = vsub.f32 1.0, %v96_v24 }
  0x22   :  { %v83_v30 = vmul.f32 %v164_v19, %v82_v25 }
  0x23   :  { %v98_v32 = vmul.f32 %v166_v21, %v97_v28 }
  0x24   :  { %v84_v33 = vadd.f32 %v164_v19, %v83_v30 }
  0x25   :  { %v99_v35 = vadd.f32 %v166_v21, %v98_v32 }
  0x26   :  { %v88_v36 = vsel %vm87_vm4, %v164_v19, %v84_v33 }
  0x27   :  { %v93_v37 = vsel %vm90_vm5, %v92_v31, %v88_v36  ;;  %v103_v38 = vsel %vm102_vm6, %v166_v21, %v99_v35 }
  0x28   :  { %v108_v39 = vsel %vm105_vm7, %v107_v34, %v103_v38  ;;  %v111_v40 = vmul.f32 %v93_v37, %v70_v3 }
  0x29   :  { %v112_v41 = vmul.f32 %v108_v39, %v71_v4  ;;  %v123_v42 = vadd.f32 %v108_v39, %v93_v37 }
  0x2b   :  { %v113_v43 = vadd.f32 %v112_v41, %v111_v40  ;;  %v124_v44 = vrot.slane %v123_v42, 4 }
  0x2d   :  { %v114_v45 = vrot.slane %v113_v43, 4  ;;  %v125_v46 = vadd.f32 %v124_v44, %v123_v42 }
  0x2f   :  { %v115_v47 = vadd.f32 %v114_v45, %v113_v43  ;;  %v126_v48 = vrot.slane %v125_v46, 2 }
  0x31   :  { %v116_v49 = vrot.slane %v115_v47, 2  ;;  %v127_v50 = vadd.f32 %v126_v48, %v125_v46 }
  0x33   :  { %v117_v51 = vadd.f32 %v116_v49, %v115_v47  ;;  %v128_v52 = vrot.slane %v127_v50, 1 }
  0x35   :  { %v118_v54 = vrot.slane %v117_v51, 1  ;;  %v129_v55 = vadd.f32 %v128_v52, %v127_v50 }
  0x37   :  { %v119_v57 = vadd.f32 %v118_v54, %v117_v51  ;;  %v130_v58 = vadd.f32 %v129_v55, %v122_v53 }
  0x39   :  { %v120_v59 = vadd.f32 %v119_v57, %v110_v56  ;;  %131 = vst [vmem:[%s268_s2 + $0x1] sm:$0x1] %v130_v58 }
  0x3b   :  { %121 = vst [vmem:[%s268_s2] sm:$0x1] %v120_v59 }
  0x3c   :  { %146 = vsyncpa [#allocation3], 1 }
  0x3d   :  { %147 = vsyncpa [#allocation5], 1 }

</bundles_post_ra>
